<compile_context>
chip_gen: v7x
topology: tpu7x:2x2x1
jax: 0.10.0
libtpu: 0.0.40
codegen_flags: <defaults>
</compile_context>

<pallas_src>
import jax
import jax.numpy as jnp
from jax.experimental import pallas as pl
from jax.experimental.pallas import tpu as pltpu


# ----------------------------- Pallas kernel ------------------------------ #
def _copy_kernel(x_ref, o_ref):
    o_ref[...] = x_ref[...]


def _pick_lane_width(total):
    """Largest lane-dense width (multiple of 128) that divides the element count."""
    for c in (1024, 512, 256, 128):
        if total % c == 0:
            return c
    return None


def _tiled_copy(flat, rows, lane_w, itemsize):
    """Lane-dense, byte-sized-tile identity copy with output aliased to input."""
    # Target ~2 MiB per buffer (dtype-aware), rounded down to a multiple of
    # 8 sublanes.  2 in-bufs + 2 out-bufs ~= 8 MiB < 16 MiB (v5e scoped default).
    target_bytes = 2 * 1024 * 1024
    max_rows = max(8, (target_bytes // (lane_w * itemsize)) // 8 * 8)
    block_rows = rows if rows <= max_rows else max_rows
    grid = (pl.cdiv(rows, block_rows),)

    return pl.pallas_call(
        _copy_kernel,
        out_shape=jax.ShapeDtypeStruct((rows, lane_w), flat.dtype),
        grid=grid,
        in_specs=[pl.BlockSpec((block_rows, lane_w), lambda i: (i, 0))],
        out_specs=pl.BlockSpec((block_rows, lane_w), lambda i: (i, 0)),
        input_output_aliases={0: 0},  # donate/reuse the input buffer
        compiler_params=pltpu.CompilerParams(
            dimension_semantics=("parallel",)),
        cost_estimate=pl.CostEstimate(
            flops=0, transcendentals=0,
            bytes_accessed=2 * rows * lane_w * itemsize),
    )(flat)


def pallas_identity(x):
    """Identity pass-through as a tiled, lane-dense Pallas copy."""
    orig_shape = x.shape
    total = x.size
    if total == 0:
        return x
    itemsize = jnp.dtype(x.dtype).itemsize

    lane_w = _pick_lane_width(total)
    if lane_w is None:
        # Robust fallback: pad to a multiple of 1024 (8x128) so the same
        # tiled, pipelined path handles arbitrarily large odd-sized inputs
        # without making the whole array VMEM-resident.
        padded = ((total + 1023) // 1024) * 1024
        flat = jnp.pad(x.reshape(-1), (0, padded - total))
        rows = padded // 1024
        out = _tiled_copy(flat.reshape(rows, 1024), rows, 1024, itemsize)
        return out.reshape(-1)[:total].reshape(orig_shape)

    rows = total // lane_w
    out = _tiled_copy(x.reshape(rows, lane_w), rows, lane_w, itemsize)
    return out.reshape(orig_shape)


# ------------------------------ Module port -------------------------------- #
class PrintLayer:
    """JAX/Pallas port of the PyTorch PrintLayer module."""

    def __init__(self, title=None):
        self.title = title

    def __call__(self, x, materialize=False):
        # Exact analog of PyTorch's eager `print(self.title, x.shape)`:
        # shapes are static, so this is a trace/call-time host print.
        print(self.title, tuple(x.shape))
        if materialize:
            # Optional materialized copy (aliased, lane-dense Pallas kernel).
            return pallas_identity(x)
        # Highest-value optimization: a pass-through moves no data at all.
        return x


# --------------------------------- main ------------------------------------ #
if __name__ == "__main__":
    key = jax.random.PRNGKey(0)
    x = jax.random.normal(key, (2, 4, 16, 16), jnp.float32)

    layer = PrintLayer("PrintLayer")

    # Default (elided) path: zero data movement.
    y_fast = jax.block_until_ready(layer(x))
    assert y_fast.shape == x.shape and y_fast.dtype == x.dtype
    assert bool(jnp.array_equal(y_fast, x)), "pass-through output differs"

    # Materialized path: exercise the improved Pallas identity kernel once.
    y_kernel = jax.block_until_ready(layer(x, materialize=True))
    assert y_kernel.shape == x.shape and y_kernel.dtype == x.dtype
    assert bool(jnp.array_equal(y_kernel, x)), "Pallas identity differs from input"

    print("KERNEL_OK")
</pallas_src>

<mosaic_0001>
module attributes {stable_mosaic.version = 11 : i64} {
  func.func @_copy_kernel(%arg0: i32, %arg1: memref<2x1024xf32, #tpu.memory_space<vmem>>, %arg2: memref<2x1024xf32, #tpu.memory_space<vmem>>) attributes {dimension_semantics = [#tpu.dimension_semantics<parallel>], iteration_bounds = array<i64: 1>, scalar_prefetch = 0 : i64, scratch_operands = 0 : i64, tpu.core_type = #tpu.core_type<tc>, window_params = [{transform_indices = @transform_0, window_bounds = array<i64: 2, 1024>}, {transform_indices = @transform_1, window_bounds = array<i64: 2, 1024>}]} {
    %c0 = arith.constant 0 : index
    %c0_0 = arith.constant 0 : index
    %0 = vector.load %arg1[%c0, %c0_0] : memref<2x1024xf32, #tpu.memory_space<vmem>>, vector<2x1024xf32>
    %c0_1 = arith.constant 0 : index
    %c0_2 = arith.constant 0 : index
    %1 = vector.load %arg2[%c0_1, %c0_2] : memref<2x1024xf32, #tpu.memory_space<vmem>>, vector<2x1024xf32>
    tpu.vector_store %arg2[%c0_1, %c0_2], %0 {strides = array<i32>} : memref<2x1024xf32, #tpu.memory_space<vmem>>, vector<2x1024xf32>,
    return
  }
  func.func @transform_0(%arg0: i32) -> (i32, i32) {
    %c0_i32 = arith.constant 0 : i32
    %c0_i32_0 = arith.constant 0 : i32
    return %arg0, %c0_i32 : i32, i32
  }
  func.func @transform_1(%arg0: i32) -> (i32, i32) {
    %c0_i32 = arith.constant 0 : i32
    %c0_i32_0 = arith.constant 0 : i32
    return %arg0, %c0_i32 : i32, i32
  }
}

</mosaic_0001>

<bundles_post_ra>
// kernel: tpu_custom_call.1
= control target key start
LH: loop header
LB: loop body
LE: loop exit
PB: predicated region body
PF: predicated region fallthrough
CT: control target
= control target key end

     0   :  { %6 = vsyncpa [#allocation3], 0  ;;  %s126_s0 = inlined_call_operand.hbm [shape: f32[2,1024], index: 0, kind: input, shape index: {}, may-alias: {0,1}]   ;;  %s127_s1 = inlined_call_operand.hbm [shape: f32[2,1024], index: 1, kind: output, shape index: {}, may-alias: {0,1}]  }
   0x1   :  { %7 = vsyncpa [#allocation4], 0  ;;  %s90_s6 = smov [#allocation2]   ;;  %s42_s10 = scalar_lea.hbm %s126_s0, 256 }
   0x2   :  { %s14_s7 = sshll.u32 %s90_s6, 4  ;;  %p43_p0 = scmp.ne.s32.totalorder %s126_s0, %s42_s10  ;;  %s15_s7 = int_to_ptr.vmem [resolvable:$true] %s14_s7 }
   0x3   :  { %p46_p1 = scmp.lt.u32.totalorder %s42_s10, %s126_s0 }
   0x5   :  { %p48_p2 = pnand %p46_p1, %p43_p0 }
   0x7   :  { %51 = shalt.err (!%p48_p2)
}
   0x8   :  { %s52_s15 = scalar_lea.vmem %s15_s7, 256  ;;  %p57_p4 = scmp.lt.s32.totalorder %s15_s7, %s15_s7 }
   0x9   :  { %p53_p3 = scmp.ne.s32.totalorder %s15_s7, %s52_s15  ;;  %p58_p5 = scmp.lt.s32.totalorder %s52_s15, %s52_s15 }
   0xb   :  { %p59_p6 = por %p58_p5, %p57_p4 }
   0xd   :  { %p60_p7 = pnand %p59_p6, %p53_p3 }
   0xf   :  { %63 = shalt.err (!%p60_p7)
}
  0x10   :  { %17 = dma.hbm_to_vmem [thread:$0]  %s126_s0, 256, %s15_s7, [#allocation3]  }
  0x11   :  { %86 = dma.done.wait [#allocation3], 256  }
  0x12   :  { %87 = vsyncadd [#allocation3], 4294967040  ;;  %s91_s18 = smov [#allocation5]   ;;  %v21_v0 = vld [vmem:[#allocation2] sm:$0xff]  ;;  %v22_v1 = vld [vmem:[#allocation2 + $0x8] sm:$0xff] }
  0x13   :  { %s31_s19 = sshll.u32 %s91_s18, 4  ;;  %23 = vst [vmem:[#allocation5] sm:$0xff] %v21_v0  ;;  %24 = vst [vmem:[#allocation5 + $0x8] sm:$0xff] %v22_v1  ;;  %s32_s19 = int_to_ptr.vmem [resolvable:$true] %s31_s19 }
  0x14   :  { %s64_s20 = scalar_lea.vmem %s32_s19, 256  ;;  %p69_p9 = scmp.lt.s32.totalorder %s32_s19, %s32_s19 }
  0x15   :  { %p65_p8 = scmp.ne.s32.totalorder %s32_s19, %s64_s20  ;;  %p70_p10 = scmp.lt.s32.totalorder %s64_s20, %s64_s20 }
  0x17   :  { %p71_p11 = por %p70_p10, %p69_p9 }
  0x19   :  { %p72_p12 = pnand %p71_p11, %p65_p8 }
  0x1b   :  { %75 = shalt.err (!%p72_p12)
}
  0x1c   :  { %s76_s0 = scalar_lea.hbm %s127_s1, 256 }
  0x1d   :  { %p77_p13 = scmp.ne.s32.totalorder %s127_s1, %s76_s0  ;;  %p80_p0 = scmp.lt.u32.totalorder %s76_s0, %s127_s1 }
  0x1f   :  { %p82_p1 = pnand %p80_p0, %p77_p13 }
  0x21   :  { %85 = shalt.err (!%p82_p1)
}
  0x22   :  { %34 = dma.vmem_to_hbm [thread:$0]  %s32_s19, 256, %s127_s1, [#allocation4]  }
  0x23   :  { %88 = dma.done.wait [#allocation4], 256  }
  0x24   :  { %89 = vsyncadd [#allocation4], 4294967040 }
  0x25   :  { %38 = vsyncpa [#allocation3], 1 }
  0x26   :  { %39 = vsyncpa [#allocation4], 1 }

</bundles_post_ra>
